<compile_context>
chip_gen: v7x
topology: tpu7x:2x2x1
jax: 0.10.0
libtpu: 0.0.40
codegen_flags: <defaults>
</compile_context>

<pallas_src>
import math

import jax
import jax.numpy as jnp
from jax.experimental import pallas as pl
from jax.experimental.pallas import tpu as pltpu


# ---------------------------------------------------------------------------
# Parameter setup (the PyTorch __init__ / register_buffer), plain JAX.
# ---------------------------------------------------------------------------
def make_pe(embed_size: int, height: int, width: int, dtype=jnp.float32):
    """Reproduces PositionalEncoding2D.__init__ buffer exactly.

    pe[even_ch, h, w] = sin(h * div_term[h])   (same for every even channel / w)
    pe[odd_ch,  h, w] = cos(w * div_term[w])   (same for every odd channel  / h)
    Requires ceil(embed_size/2) >= height and >= width (the same constraint
    the PyTorch broadcasting imposes).
    """
    div_term = jnp.exp(
        jnp.arange(0, embed_size, 2, dtype=jnp.float32)
        * (-math.log(10000.0) / embed_size)
    )
    n_even = div_term.shape[0]          # channels 0,2,4,...
    n_odd = embed_size // 2             # channels 1,3,5,...
    if n_even < height or n_even < width:
        raise ValueError(
            "PositionalEncoding2D requires ceil(embed_size/2) >= height and "
            f">= width (got embed_size={embed_size}, height={height}, "
            f"width={width})."
        )

    h_idx = jnp.arange(height, dtype=jnp.float32)
    w_idx = jnp.arange(width, dtype=jnp.float32)
    sin_vals = jnp.sin(h_idx * div_term[:height])   # (H,)
    cos_vals = jnp.cos(w_idx * div_term[:width])    # (W,)

    pe_even = jnp.broadcast_to(sin_vals[None, :, None], (n_even, height, width))
    pe_odd = jnp.broadcast_to(cos_vals[None, None, :], (n_odd, height, width))

    pe = jnp.zeros((embed_size, height, width), dtype)
    pe = pe.at[0::2].set(pe_even.astype(dtype))
    pe = pe.at[1::2].set(pe_odd.astype(dtype))
    return pe


# ---------------------------------------------------------------------------
# Kernel body: blocks are shaped so x/pe/out match exactly -> plain 2-D add.
# ---------------------------------------------------------------------------
def _add_pe_kernel(x_ref, pe_ref, o_ref):
    o_ref[...] = x_ref[...] + pe_ref[...]


# ---------------------------------------------------------------------------
# Helpers.
# ---------------------------------------------------------------------------
def _cdiv(a: int, b: int) -> int:
    return (a + b - 1) // b


def _sublane_quantum(itemsize: int) -> int:
    # f32 -> 8, bf16 -> 16, int8/fp8 -> 32 (sub-32-bit dtypes pack along
    # sublanes; blocks should be multiples of the packed tile height).
    return 8 * max(1, 4 // itemsize)


def _vmem_budget_bytes() -> int:
    """Generation-aware scoped-VMEM limit (leaves headroom below physical)."""
    cap = 64 * 1024 * 1024  # conservative default: v7x per-TensorCore VMEM
    try:
        info_cap = getattr(pltpu.get_tpu_info(), "vmem_capacity_bytes", None)
        if info_cap:
            cap = int(info_cap)
    except Exception:
        pass
    cap = min(cap, 128 * 1024 * 1024)
    # v5e/v6e (128 MiB) -> 112 MiB limit; v7x (64 MiB) -> 56 MiB limit.
    return cap - max(8 * 1024 * 1024, cap // 8)


def _factor_lane_dense(n: int, sublane: int):
    """Factor n = R * C with C a multiple of 128; prefer R % sublane == 0.

    Returns None when n is not a multiple of 128.
    """
    if n % 128 != 0:
        return None
    best = None
    for c in (2048, 1024, 512, 4096, 256, 8192, 128):
        if n % c:
            continue
        r = n // c
        if r % sublane == 0:
            return r, c
        if best is None:
            best = (r, c)
    return best


# ---------------------------------------------------------------------------
# Forward: x + pe.
# ---------------------------------------------------------------------------
def positional_encoding_2d(
    x: jax.Array,
    pe: jax.Array,
    *,
    target_block_bytes: int = 16 * 1024 * 1024,
    donate_x: bool = False,
) -> jax.Array:
    """forward(x) = x + pe, x: (B, E, H, W), pe: (E, H, W)."""
    B, E, H, W = x.shape
    assert pe.shape == (E, H, W)
    pe = pe.astype(x.dtype)  # no-op for the f32 module; keeps blocks uniform

    itemsize = x.dtype.itemsize
    q = _sublane_quantum(itemsize)
    N = E * H * W

    vmem_limit = _vmem_budget_bytes()
    # x, out and pe blocks are each (up to) double-buffered -> ~6x block bytes.
    max_block_bytes = max(
        128 * 128 * itemsize,
        min(target_block_bytes, (vmem_limit - 4 * 1024 * 1024) // 6),
    )
    compiler_kwargs = dict(vmem_limit_bytes=vmem_limit)
    io_alias = {0: 0} if donate_x else {}

    factor = _factor_lane_dense(N, q)
    if factor is None:
        # --------------- fallback: E*H*W not a multiple of 128 ---------------
        # Tile the E dimension so VMEM stays bounded and pipelining works.
        # TODO(synk): pad H*W up to a multiple of 128 (lane-dense slab) to
        # avoid masked vst when W < 128.
        e_block = max(1, min(E, max_block_bytes // max(1, H * W * itemsize)))
        return pl.pallas_call(
            _add_pe_kernel,
            out_shape=jax.ShapeDtypeStruct((B, E, H, W), x.dtype),
            grid_spec=pltpu.PrefetchScalarGridSpec(
                num_scalar_prefetch=0,
                # batch innermost: pe block index constant across the batch
                # sweep -> each pe chunk DMAed once per chunk.
                grid=(_cdiv(E, e_block), B),
                in_specs=[
                    pl.BlockSpec((pl.Squeezed(), e_block, H, W),
                                 lambda e, b: (b, e, 0, 0)),
                    pl.BlockSpec((e_block, H, W), lambda e, b: (e, 0, 0)),
                ],
                out_specs=pl.BlockSpec((pl.Squeezed(), e_block, H, W),
                                       lambda e, b: (b, e, 0, 0)),
            ),
            input_output_aliases=io_alias,
            compiler_params=pltpu.CompilerParams(
                dimension_semantics=("parallel", "parallel"),
                **compiler_kwargs),
        )(x, pe)

    R, C = factor                       # per-batch slab is (R, C), C % 128 == 0
    max_block_rows = max(q, max_block_bytes // (C * itemsize))

    if R % q == 0 and R <= max_block_rows:
        # --------------------------- grouped path ---------------------------
        # One block spans g whole (E,H,W) slabs; pe is replicated g times in
        # the wrapper (tiny, one-time) and kept fully VMEM-resident via a
        # constant-index BlockSpec -> exactly one pe DMA for the whole kernel.
        T = B * R
        g = max(1, min(B, max_block_rows // R))
        # Keep >= 2 grid points when possible so v7x megacore can split.
        if _cdiv(B, g) < 2 and g > 1:
            g = _cdiv(B, 2)
        Sg = g * R
        n_blocks = _cdiv(T, Sg)

        x2 = x.reshape(T, C)            # free row-major metadata reshape
        pe2 = pe.reshape(R, C)
        pe_big = jnp.tile(pe2, (g, 1)) if g > 1 else pe2

        out2 = pl.pallas_call(
            _add_pe_kernel,
            out_shape=jax.ShapeDtypeStruct((T, C), x.dtype),
            grid_spec=pltpu.PrefetchScalarGridSpec(
                num_scalar_prefetch=0,
                grid=(n_blocks,),
                in_specs=[
                    pl.BlockSpec((Sg, C), lambda i: (i, 0)),
                    pl.BlockSpec((Sg, C), lambda i: (0, 0)),  # resident pe
                ],
                out_specs=pl.BlockSpec((Sg, C), lambda i: (i, 0)),
            ),
            input_output_aliases=io_alias,
            compiler_params=pltpu.CompilerParams(
                dimension_semantics=("parallel",), **compiler_kwargs),
        )(x2, pe_big)
        return out2.reshape(B, E, H, W)

    # ----------------------------- chunked path -----------------------------
    # Per-batch slab larger than one block (or R not a sublane multiple).
    S = min(R, max_block_rows)
    if S < R:
        S = max(8, (S // q) * q)
    # v7x megacore: ensure the grid has >= 2 useful points.
    if B * _cdiv(R, S) < 2 and R >= 2 * q:
        S = max(q, ((_cdiv(R, 2) + q - 1) // q) * q)
    n_chunks = _cdiv(R, S)

    x3 = x.reshape(B, R, C)             # free row-major metadata reshapes
    pe2 = pe.reshape(R, C)

    out3 = pl.pallas_call(
        _add_pe_kernel,
        out_shape=jax.ShapeDtypeStruct((B, R, C), x.dtype),
        grid_spec=pltpu.PrefetchScalarGridSpec(
            num_scalar_prefetch=0,
            # batch innermost: pe block index constant across the batch sweep
            # -> each pe chunk is DMAed from HBM exactly once.
            grid=(n_chunks, B),
            in_specs=[
                pl.BlockSpec((pl.Squeezed(), S, C), lambda c, b: (b, c, 0)),
                pl.BlockSpec((S, C), lambda c, b: (c, 0)),
            ],
            out_specs=pl.BlockSpec((pl.Squeezed(), S, C),
                                   lambda c, b: (b, c, 0)),
        ),
        input_output_aliases=io_alias,
        compiler_params=pltpu.CompilerParams(
            dimension_semantics=("parallel", "parallel"), **compiler_kwargs),
    )(x3, pe2)
    return out3.reshape(B, E, H, W)


if __name__ == "__main__":
    # Shapes consistent with the module: need ceil(E/2) >= H and >= W.
    B, E, H, W = 2, 32, 16, 16

    key = jax.random.PRNGKey(0)
    x = jax.random.normal(key, (B, E, H, W), dtype=jnp.float32)
    pe = make_pe(E, H, W, dtype=jnp.float32)

    fwd = jax.jit(positional_encoding_2d)
    out = jax.block_until_ready(fwd(x, pe))

    # Sanity check against the plain-JAX reference of the forward pass.
    ref = x + pe[None, ...]
    assert out.shape == (B, E, H, W)
    assert jnp.allclose(out, ref, atol=1e-6, rtol=1e-6)

    print("KERNEL_OK")
</pallas_src>

<mosaic_0001>
module attributes {stable_mosaic.version = 11 : i64} {
  func.func @_add_pe_kernel(%arg0: i32, %arg1: memref<8x1024xf32, #tpu.memory_space<vmem>>, %arg2: memref<8x1024xf32, #tpu.memory_space<vmem>>, %arg3: memref<8x1024xf32, #tpu.memory_space<vmem>>) attributes {dimension_semantics = [#tpu.dimension_semantics<parallel>], iteration_bounds = array<i64: 2>, scalar_prefetch = 0 : i64, scratch_operands = 0 : i64, tpu.core_type = #tpu.core_type<tc>, window_params = [{transform_indices = @transform_0, window_bounds = array<i64: 8, 1024>}, {pipeline_mode = #tpu.pipeline_mode<synchronous>, transform_indices = @transform_1, window_bounds = array<i64: 8, 1024>}, {transform_indices = @transform_2, window_bounds = array<i64: 8, 1024>}]} {
    %c0 = arith.constant 0 : index
    %c0_0 = arith.constant 0 : index
    %0 = vector.load %arg1[%c0, %c0_0] : memref<8x1024xf32, #tpu.memory_space<vmem>>, vector<8x1024xf32>
    %c0_1 = arith.constant 0 : index
    %c0_2 = arith.constant 0 : index
    %1 = vector.load %arg2[%c0_1, %c0_2] : memref<8x1024xf32, #tpu.memory_space<vmem>>, vector<8x1024xf32>
    %2 = arith.addf %0, %1 : vector<8x1024xf32>
    %c0_3 = arith.constant 0 : index
    %c0_4 = arith.constant 0 : index
    %3 = vector.load %arg3[%c0_3, %c0_4] : memref<8x1024xf32, #tpu.memory_space<vmem>>, vector<8x1024xf32>
    tpu.vector_store %arg3[%c0_3, %c0_4], %2 {strides = array<i32>} : memref<8x1024xf32, #tpu.memory_space<vmem>>, vector<8x1024xf32>,
    return
  }
  func.func @transform_0(%arg0: i32) -> (i32, i32) {
    %c0_i32 = arith.constant 0 : i32
    %c0_i32_0 = arith.constant 0 : i32
    return %arg0, %c0_i32 : i32, i32
  }
  func.func @transform_1(%arg0: i32) -> (i32, i32) {
    %c0_i32 = arith.constant 0 : i32
    %c0_i32_0 = arith.constant 0 : i32
    %c0_i32_1 = arith.constant 0 : i32
    return %c0_i32, %c0_i32_0 : i32, i32
  }
  func.func @transform_2(%arg0: i32) -> (i32, i32) {
    %c0_i32 = arith.constant 0 : i32
    %c0_i32_0 = arith.constant 0 : i32
    return %arg0, %c0_i32 : i32, i32
  }
}

</mosaic_0001>

<bundles_post_ra>
// kernel: positional_encoding_2d.1
= control target key start
LH: loop header
LB: loop body
LE: loop exit
PB: predicated region body
PF: predicated region fallthrough
CT: control target
= control target key end

     0   :  { %s275_s9 = smov 0   ;;  %s316_s0 = inlined_call_operand.vmem [shape: f32[16,1024], index: 0, kind: input, shape index: {}]   ;;  %s317_s1 = inlined_call_operand.vmem [shape: f32[8,1024], index: 1, kind: input, shape index: {}]   ;;  %s318_s2 = inlined_call_operand.vmem [shape: f32[16,1024], index: 2, kind: output, shape index: {}]  }
   0x1 LB: > { %s231_s10 = sadd.s32 4294967295, %s258_s9   ;;  %p235_p0 = scmp.ge.s32.totalorder %s258_s9, 1  ;;  %s258_s9 = sphi %s275_s9, %s12_s9  }
   0x2   : > { %p112_p1 = scmp.lt.s32.totalorder %s258_s9, 3 }
   0x4   : > { %p113_p2 = pnand %p235_p0, %p112_p1 }
   0x5   : > { %p134_p3 = scmp.lt.s32.totalorder (!%p113_p2), %s231_s10, 1  ;;  %v152_v0 = vld [vmem:[%s317_s1] sm:$0xff] (!%p113_p2)  ;;  %v153_v1 = vld [vmem:[%s317_s1 + $0x8] sm:$0xff] (!%p113_p2)  ;;  %v154_v2 = vld [vmem:[%s317_s1 + $0x10] sm:$0xff] (!%p113_p2) }
   0x6   : > { %116 = sbr.rel (%p113_p2) target bundleno = 23 (0x17), region = 28  ;;  %v155_v3 = vld [vmem:[%s317_s1 + $0x18] sm:$0xff] (!%p113_p2)  ;;  %v156_v4 = vld [vmem:[%s317_s1 + $0x20] sm:$0xff] (!%p113_p2)  ;;  %v157_v5 = vld [vmem:[%s317_s1 + $0x28] sm:$0xff] (!%p113_p2) }
   0x7   : > { %v158_v6 = vld [vmem:[%s317_s1 + $0x30] sm:$0xff] (!%p113_p2)  ;;  %v159_v7 = vld [vmem:[%s317_s1 + $0x38] sm:$0xff] (!%p113_p2) }
   0xd   : > { %s320_s10 = smov (!%p134_p3, %s231_s10), 1 }
   0xe   : > { %s242_s15 = sshll.u32 %s320_s10, 6 }
   0xf   : > { %s138_s24 = scalar_lea.vmem %s316_s0, %s242_s15  ;;  %s143_s5 = scalar_lea.vmem %s318_s2, %s242_s15 }
  0x10   : > { %v144_v8 = vld [vmem:[%s138_s24] sm:$0xff]  ;;  %v145_v9 = vld [vmem:[%s138_s24 + $0x8] sm:$0xff]  ;;  %v146_v10 = vld [vmem:[%s138_s24 + $0x10] sm:$0xff] }
  0x11   : > { %v160_v11 = vadd.f32 %v152_v0, %v144_v8  ;;  %v161_v12 = vadd.f32 %v153_v1, %v145_v9  ;;  %v162_v13 = vadd.f32 %v154_v2, %v146_v10  ;;  %v147_v14 = vld [vmem:[%s138_s24 + $0x18] sm:$0xff]  ;;  %v148_v15 = vld [vmem:[%s138_s24 + $0x20] sm:$0xff]  ;;  %v149_v16 = vld [vmem:[%s138_s24 + $0x28] sm:$0xff] }
  0x12   : > { %v163_v17 = vadd.f32 %v155_v3, %v147_v14  ;;  %v164_v18 = vadd.f32 %v156_v4, %v148_v15  ;;  %v165_v19 = vadd.f32 %v157_v5, %v149_v16  ;;  %v150_v20 = vld [vmem:[%s138_s24 + $0x30] sm:$0xff]  ;;  %v151_v21 = vld [vmem:[%s138_s24 + $0x38] sm:$0xff] }
  0x13   : > { %168 = vst [vmem:[%s143_s5] sm:$0xff] %v160_v11  ;;  %169 = vst [vmem:[%s143_s5 + $0x8] sm:$0xff] %v161_v12  ;;  %v166_v22 = vadd.f32 %v158_v6, %v150_v20  ;;  %v167_v23 = vadd.f32 %v159_v7, %v151_v21 }
  0x14   : > { %170 = vst [vmem:[%s143_s5 + $0x10] sm:$0xff] %v162_v13  ;;  %171 = vst [vmem:[%s143_s5 + $0x18] sm:$0xff] %v163_v17 }
  0x15   : > { %172 = vst [vmem:[%s143_s5 + $0x20] sm:$0xff] %v164_v18  ;;  %173 = vst [vmem:[%s143_s5 + $0x28] sm:$0xff] %v165_v19 }
  0x16   : > { %174 = vst [vmem:[%s143_s5 + $0x30] sm:$0xff] %v166_v22  ;;  %175 = vst [vmem:[%s143_s5 + $0x38] sm:$0xff] %v167_v23 }
  0x17 PF: > { %s12_s9 = sadd.s32 1, %s258_s9  }
  0x18   : > { %p9_p4 = scmp.ge.s32.totalorder %s12_s9, 4  }
  0x1a   :  { %11 = sbr.rel (!%p9_p4) target bundleno = 1 (0x1), region = 58 }

</bundles_post_ra>
